<compile_context>
chip_gen: v5e
topology: v5e:2x2
jax: 0.10.0
libtpu: 0.0.40
codegen_flags: <defaults>
</compile_context>

<pallas_src>
import functools

import jax
import jax.numpy as jnp
from jax.experimental import pallas as pl
from jax.experimental.pallas import tpu as pltpu

LN_EPS = 1e-5   # nn.LayerNorm default
LANE = 128      # TPU vreg lane width
SUBLANE = 8     # TPU vreg sublane count


def _round_up(n, m):
    return ((n + m - 1) // m) * m


def prepare_params(w, b, gamma, beta, compute_dtype=jnp.float32):
    """One-time parameter packing (NOT per forward call).

    w: (D, D) torch nn.Linear layout [out, in];  b, gamma, beta: (D,).
    Returns padded, pre-transposed weight (Dp, Dp) in `compute_dtype` and a
    packed (3, Dp) f32 array holding [bias; gamma; beta].
    """
    D = w.shape[0]
    Dp = max(_round_up(D, LANE), LANE)

    # Pre-transpose once so the kernel does x @ wt; zero-pad so that:
    #   - padded *input* rows contribute nothing to the contraction,
    #   - padded *output* cols (and zero bias) make h[:, D:] exactly 0.
    wt = jnp.zeros((Dp, Dp), compute_dtype)
    wt = wt.at[:D, :D].set(w.T.astype(compute_dtype))

    pk = jnp.zeros((3, Dp), jnp.float32)
    pk = pk.at[0, :D].set(b.astype(jnp.float32))      # bias
    pk = pk.at[1, :D].set(gamma.astype(jnp.float32))  # LN gamma
    pk = pk.at[2, :D].set(beta.astype(jnp.float32))   # LN beta
    return {"wt": wt, "pk": pk, "dim": D}


def residual_block_kernel(x_ref, wt_ref, pk_ref, o_ref, *, dim, compute_dtype):
    # x_ref:  (TB, Dp)  padded input rows (f32)
    # wt_ref: (Dp, Dp)  pre-transposed, padded weight (compute_dtype)
    # pk_ref: (3,  Dp)  packed [bias; gamma; beta] (f32)
    # o_ref:  (TB, Dp)  padded output rows
    x = x_ref[...]
    pk = pk_ref[...]
    bias = pk[0:1, :]
    gamma = pk[1:2, :]
    beta = pk[2:3, :]

    # Linear on the MXU; f32 accumulation regardless of compute dtype.
    h = jnp.dot(x.astype(compute_dtype), wt_ref[...],
                preferred_element_type=jnp.float32)
    h = h + bias                                  # lanes >= dim stay exactly 0

    # LayerNorm over the *real* D features only (mask out padded lanes).
    inv_d = 1.0 / dim
    mean = jnp.sum(h, axis=-1, keepdims=True) * inv_d   # pad lanes are 0
    lane = jax.lax.broadcasted_iota(jnp.int32, h.shape, dimension=1)
    valid = lane < dim
    centered = jnp.where(valid, h - mean, 0.0)
    var = jnp.sum(centered * centered, axis=-1, keepdims=True) * inv_d
    hn = centered * jax.lax.rsqrt(var + LN_EPS)
    hn = hn * gamma + beta                        # pad lanes: 0*0 + 0 = 0

    # ReLU + residual; padded lanes/rows remain 0 / junk and are sliced away.
    o_ref[...] = (x + jnp.maximum(hn, 0.0)).astype(o_ref.dtype)


def residual_block(x, params, *, block_rows=256):
    """x: (B, D) f32; params from prepare_params(). Returns (B, D)."""
    D = params["dim"]
    wt = params["wt"]
    pk = params["pk"]
    Dp = wt.shape[0]
    B = x.shape[0]

    # Row tile: multiple of 8 sublanes, capped at block_rows for pipelining.
    TB = min(_round_up(B, SUBLANE), _round_up(block_rows, SUBLANE))
    Bp = _round_up(B, TB)

    # One lane-dense padded activation buffer (zeros in padded rows/lanes).
    xp = jnp.zeros((Bp, Dp), x.dtype).at[:B, :D].set(x)

    kernel = functools.partial(residual_block_kernel,
                               dim=D, compute_dtype=wt.dtype)

    out = pl.pallas_call(
        kernel,
        out_shape=jax.ShapeDtypeStruct((Bp, Dp), x.dtype),
        grid=(Bp // TB,),
        in_specs=[
            pl.BlockSpec((TB, Dp), lambda i: (i, 0)),   # activations: tiled rows
            pl.BlockSpec((Dp, Dp), lambda i: (0, 0)),   # weight: resident
            pl.BlockSpec((3, Dp), lambda i: (0, 0)),    # packed bias/gamma/beta
        ],
        out_specs=pl.BlockSpec((TB, Dp), lambda i: (i, 0)),
        compiler_params=pltpu.CompilerParams(
            # Batch rows are independent -> shard across v7x's 2 TensorCores;
            # free no-op on single-TC v5e/v6e.
            dimension_semantics=("parallel",),
        ),
    )(xp, wt, pk)

    return out[:B, :D]


def residual_block_ref(x, w, b, gamma, beta):
    """Pure-JAX reference matching PyTorch semantics."""
    h = x @ w.T + b
    mean = jnp.mean(h, axis=-1, keepdims=True)
    var = jnp.mean((h - mean) ** 2, axis=-1, keepdims=True)
    hn = (h - mean) / jnp.sqrt(var + LN_EPS)
    hn = hn * gamma + beta
    return x + jnp.maximum(hn, 0.0)


if __name__ == "__main__":
    key = jax.random.PRNGKey(0)
    B, D = 8, 32  # small shapes: batch=8, hidden dim=32

    kx, kw, kb, kx2 = jax.random.split(key, 4)
    x = jax.random.normal(kx, (B, D), dtype=jnp.float32)

    # Deterministic parameter init (mimicking torch Linear's uniform range);
    # LayerNorm affine params use PyTorch defaults (gamma=1, beta=0).
    bound = 1.0 / (D ** 0.5)
    w = jax.random.uniform(kw, (D, D), jnp.float32, -bound, bound)
    b = jax.random.uniform(kb, (D,), jnp.float32, -bound, bound)
    gamma = jnp.ones((D,), jnp.float32)
    beta = jnp.zeros((D,), jnp.float32)

    # f32 MXU path
    params_f32 = prepare_params(w, b, gamma, beta, compute_dtype=jnp.float32)
    out = residual_block(x, params_f32)
    jax.block_until_ready(out)
    ref = residual_block_ref(x, w, b, gamma, beta)
    assert out.shape == (B, D)
    assert jnp.allclose(out, ref, atol=1e-5, rtol=1e-5), "f32 mismatch vs reference"

    # Larger, non-aligned batch exercising the pipelined/parallel row grid
    B2 = 300
    x2 = jax.random.normal(kx2, (B2, D), dtype=jnp.float32)
    out2 = residual_block(x2, params_f32)
    jax.block_until_ready(out2)
    ref2 = residual_block_ref(x2, w, b, gamma, beta)
    assert out2.shape == (B2, D)
    assert jnp.allclose(out2, ref2, atol=1e-5, rtol=1e-5), "grid-path mismatch"

    # bf16 MXU path (native on v6e/v7x); LN/ReLU/residual remain f32.
    params_bf16 = prepare_params(w, b, gamma, beta, compute_dtype=jnp.bfloat16)
    out_bf = residual_block(x, params_bf16)
    jax.block_until_ready(out_bf)
    assert jnp.allclose(out_bf, ref, atol=1e-1, rtol=1e-1), "bf16 path mismatch"

    print("KERNEL_OK")
</pallas_src>

<mosaic_0001>
module attributes {stable_mosaic.version = 11 : i64} {
  func.func @residual_block_kernel(%arg0: i32, %arg1: memref<8x128xf32, #tpu.memory_space<vmem>>, %arg2: memref<128x128xf32, #tpu.memory_space<vmem>>, %arg3: memref<3x128xf32, #tpu.memory_space<vmem>>, %arg4: memref<8x128xf32, #tpu.memory_space<vmem>>) attributes {dimension_semantics = [#tpu.dimension_semantics<parallel>], iteration_bounds = array<i64: 1>, scalar_prefetch = 0 : i64, scratch_operands = 0 : i64, tpu.core_type = #tpu.core_type<tc>, window_params = [{transform_indices = @transform_0, window_bounds = array<i64: 8, 128>}, {pipeline_mode = #tpu.pipeline_mode<synchronous>, transform_indices = @transform_1, window_bounds = array<i64: 128, 128>}, {pipeline_mode = #tpu.pipeline_mode<synchronous>, transform_indices = @transform_2, window_bounds = array<i64: 3, 128>}, {transform_indices = @transform_3, window_bounds = array<i64: 8, 128>}]} {
    %c0 = arith.constant 0 : index
    %c0_0 = arith.constant 0 : index
    %0 = vector.load %arg1[%c0, %c0_0] : memref<8x128xf32, #tpu.memory_space<vmem>>, vector<8x128xf32>
    %c0_1 = arith.constant 0 : index
    %c0_2 = arith.constant 0 : index
    %1 = vector.load %arg3[%c0_1, %c0_2] : memref<3x128xf32, #tpu.memory_space<vmem>>, vector<3x128xf32>
    %2 = vector.extract_strided_slice %1 {offsets = [0, 0], sizes = [1, 128], strides = [1, 1]} : vector<3x128xf32> to vector<1x128xf32>
    %3 = vector.extract_strided_slice %1 {offsets = [1, 0], sizes = [1, 128], strides = [1, 1]} : vector<3x128xf32> to vector<1x128xf32>
    %4 = vector.extract_strided_slice %1 {offsets = [2, 0], sizes = [1, 128], strides = [1, 1]} : vector<3x128xf32> to vector<1x128xf32>
    %c0_3 = arith.constant 0 : index
    %c0_4 = arith.constant 0 : index
    %5 = vector.load %arg2[%c0_3, %c0_4] : memref<128x128xf32, #tpu.memory_space<vmem>>, vector<128x128xf32>
    %cst = arith.constant dense<0.000000e+00> : vector<8x128xf32>
    %6 = tpu.matmul %0, %5, %cst {dimension_numbers = #tpu.dot_dimension_numbers<[1], [0], [0], [1], [0, 0, 1, 1], [], []>} : vector<8x128xf32>, vector<128x128xf32>, vector<8x128xf32> -> vector<8x128xf32>
    %7 = vector.broadcast %2 : vector<1x128xf32> to vector<8x128xf32>
    %8 = arith.addf %6, %7 : vector<8x128xf32>
    %cst_5 = arith.constant dense<0.000000e+00> : vector<8xf32>
    %9 = vector.multi_reduction <add>, %8, %cst_5 [1] : vector<8x128xf32> to vector<8xf32>
    %10 = vector.shape_cast %9 : vector<8xf32> to vector<8x1xf32>
    %cst_6 = arith.constant 3.125000e-02 : f32
    %11 = vector.broadcast %cst_6 : f32 to vector<8x1xf32>
    %12 = arith.mulf %10, %11 : vector<8x1xf32>
    %13 = tpu.iota {dimensions = array<i32: 1>} : vector<8x128xi32>
    %c32_i32 = arith.constant 32 : i32
    %14 = vector.broadcast %c32_i32 : i32 to vector<8x128xi32>
    %15 = arith.cmpi slt, %13, %14 : vector<8x128xi32>
    %16 = vector.broadcast %12 : vector<8x1xf32> to vector<8x128xf32>
    %17 = arith.subf %8, %16 : vector<8x128xf32>
    %cst_7 = arith.constant 0.000000e+00 : f32
    %18 = vector.broadcast %cst_7 : f32 to vector<8x128xf32>
    %19 = arith.select %15, %17, %18 : vector<8x128xi1>, vector<8x128xf32>
    %20 = arith.mulf %19, %19 : vector<8x128xf32>
    %cst_8 = arith.constant dense<0.000000e+00> : vector<8xf32>
    %21 = vector.multi_reduction <add>, %20, %cst_8 [1] : vector<8x128xf32> to vector<8xf32>
    %22 = vector.shape_cast %21 : vector<8xf32> to vector<8x1xf32>
    %cst_9 = arith.constant 3.125000e-02 : f32
    %23 = vector.broadcast %cst_9 : f32 to vector<8x1xf32>
    %24 = arith.mulf %22, %23 : vector<8x1xf32>
    %cst_10 = arith.constant 9.99999974E-6 : f32
    %25 = vector.broadcast %cst_10 : f32 to vector<8x1xf32>
    %26 = arith.addf %24, %25 : vector<8x1xf32>
    %27 = math.rsqrt %26 : vector<8x1xf32>
    %28 = vector.broadcast %27 : vector<8x1xf32> to vector<8x128xf32>
    %29 = arith.mulf %19, %28 : vector<8x128xf32>
    %30 = vector.broadcast %3 : vector<1x128xf32> to vector<8x128xf32>
    %31 = arith.mulf %29, %30 : vector<8x128xf32>
    %32 = vector.broadcast %4 : vector<1x128xf32> to vector<8x128xf32>
    %33 = arith.addf %31, %32 : vector<8x128xf32>
    %cst_11 = arith.constant 0.000000e+00 : f32
    %34 = vector.broadcast %cst_11 : f32 to vector<8x128xf32>
    %35 = arith.maximumf %33, %34 : vector<8x128xf32>
    %36 = arith.addf %0, %35 : vector<8x128xf32>
    %c0_12 = arith.constant 0 : index
    %c0_13 = arith.constant 0 : index
    %37 = vector.load %arg4[%c0_12, %c0_13] : memref<8x128xf32, #tpu.memory_space<vmem>>, vector<8x128xf32>
    tpu.vector_store %arg4[%c0_12, %c0_13], %36 {strides = array<i32>} : memref<8x128xf32, #tpu.memory_space<vmem>>, vector<8x128xf32>,
    return
  }
  func.func @transform_0(%arg0: i32) -> (i32, i32) {
    %c0_i32 = arith.constant 0 : i32
    %c0_i32_0 = arith.constant 0 : i32
    return %arg0, %c0_i32 : i32, i32
  }
  func.func @transform_1(%arg0: i32) -> (i32, i32) {
    %c0_i32 = arith.constant 0 : i32
    %c0_i32_0 = arith.constant 0 : i32
    %c0_i32_1 = arith.constant 0 : i32
    return %c0_i32, %c0_i32_0 : i32, i32
  }
  func.func @transform_2(%arg0: i32) -> (i32, i32) {
    %c0_i32 = arith.constant 0 : i32
    %c0_i32_0 = arith.constant 0 : i32
    %c0_i32_1 = arith.constant 0 : i32
    return %c0_i32, %c0_i32_0 : i32, i32
  }
  func.func @transform_3(%arg0: i32) -> (i32, i32) {
    %c0_i32 = arith.constant 0 : i32
    %c0_i32_0 = arith.constant 0 : i32
    return %arg0, %c0_i32 : i32, i32
  }
}

</mosaic_0001>

<bundles_post_ra>
// kernel: tpu_custom_call.1
= control target key start
LH: loop header
LB: loop body
LE: loop exit
PB: predicated region body
PF: predicated region fallthrough
CT: control target
= control target key end

     0   :  { %8 = vsyncpa [#allocation3], 0  ;;  %s294_s0 = inlined_call_operand.hbm [shape: f32[8,128], index: 0, kind: input, shape index: {}]   ;;  %s295_s1 = inlined_call_operand.hbm [shape: f32[128,128], index: 1, kind: input, shape index: {}]   ;;  %s296_s2 = inlined_call_operand.hbm [shape: f32[3,128], index: 2, kind: input, shape index: {}]   ;;  %s297_s3 = inlined_call_operand.hbm [shape: f32[8,128], index: 3, kind: output, shape index: {}]  }
   0x1   :  { %9 = vsyncpa [#allocation6], 0  ;;  %s26_s14 = sshll.u32 %s295_s1, 4  ;;  %s27_s14 = int_to_ptr.hbm [resolvable:$true] %s26_s14 }
   0x2   :  { %10 = vsyncpa [#allocation4], 0  ;;  %s256_s15 = smov [#allocation5]   ;;  %s16_s19 = sshll.u32 %s294_s0, 4  ;;  %s17_s19 = int_to_ptr.hbm [resolvable:$true] %s16_s19 }
   0x3   :  { %s28_s16 = sshll.u32 %s256_s15, 4  ;;  %s257_s20 = smov 128   ;;  %s29_s16 = int_to_ptr.vmem [resolvable:$true] %s28_s16 }
   0x4   :  { %s258_s21 = smov 8   ;;  %s259_s22 = smov [#allocation2]  }
   0x5   :  { %34 = dma.hbm_to_vmem [thread:$0]  %s27_s14, 2048, %s29_s16, [#allocation6], %s257_s20, %s257_s20, %s258_s21  }
   0x6   :  { %s18_s23 = sshll.u32 %s259_s22, 4  ;;  %s40_s26 = sshll.u32 %s296_s2, 4  ;;  %s19_s23 = int_to_ptr.vmem [resolvable:$true] %s18_s23  ;;  %s41_s26 = int_to_ptr.hbm [resolvable:$true] %s40_s26 }
   0x7   :  { %21 = dma.hbm_to_vmem [thread:$0]  %s17_s19, 128, %s19_s23, [#allocation3]  }
   0x8   :  { %s260_s1 = smov [#allocation7]  }
   0x9   :  { %s42_s27 = sshll.u32 %s260_s1, 4  ;;  %s43_s27 = int_to_ptr.vmem [resolvable:$true] %s42_s27 }
   0xa   :  { %45 = dma.hbm_to_vmem [thread:$0]  %s41_s26, 64, %s43_s27, [#allocation6]  }
   0xb   :  { %250 = dma.done.wait [#allocation3], 128  }
   0xc   :  { %251 = vsyncadd [#allocation3], 4294967168 }
   0xd   :  { %252 = dma.done.wait [#allocation6], 2112  }
   0xe   :  { %253 = vsyncadd [#allocation6], 4294965184  ;;  %v75_v0 = vld [vmem:[#allocation5 + $0x78] sm:$0xff]  ;;  %v74_v1 = vld [vmem:[#allocation5 + $0x70] sm:$0xff]  ;;  %v100_v21 = vlaneseq  ;;  %s261_s0 = smov [#allocation8]   ;;  %s135_s30 = sshll.u32 %s297_s3, 4  ;;  %s136_s30 = int_to_ptr.hbm [resolvable:$true] %s135_s30 }
   0xf   :  { %77 = vmatpush.msra.mxu0 %v75_v0  ;;  %v73_v2 = vld [vmem:[#allocation5 + $0x68] sm:$0xff]  ;;  %v72_v3 = vld [vmem:[#allocation5 + $0x60] sm:$0xff]  ;;  %v71_v4 = vld [vmem:[#allocation5 + $0x58] sm:$0xff]  ;;  %s133_s2 = sshll.u32 %s261_s0, 4  ;;  %s134_s2 = int_to_ptr.vmem [resolvable:$true] %s133_s2 }
  0x10   :  { %v70_v5 = vld [vmem:[#allocation5 + $0x50] sm:$0xff]  ;;  %v69_v6 = vld [vmem:[#allocation5 + $0x48] sm:$0xff]  ;;  %v68_v7 = vld [vmem:[#allocation5 + $0x40] sm:$0xff]  ;;  %v101_v22 = vand.u32 127, %v100_v21 }
  0x11   :  { %78 = vmatpush.msra.mxu0 %v74_v1  ;;  %v67_v8 = vld [vmem:[#allocation5 + $0x38] sm:$0xff]  ;;  %v66_v9 = vld [vmem:[#allocation5 + $0x30] sm:$0xff]  ;;  %v65_v10 = vld [vmem:[#allocation5 + $0x28] sm:$0xff] }
  0x12   :  { %v64_v11 = vld [vmem:[#allocation5 + $0x20] sm:$0xff]  ;;  %v63_v12 = vld [vmem:[#allocation5 + $0x18] sm:$0xff]  ;;  %v62_v13 = vld [vmem:[#allocation5 + $0x10] sm:$0xff]  ;;  %vm102_vm0 = vcmp.lt.s32.totalorder %v101_v22, 32 }
  0x13   :  { %79 = vmatpush.msra.mxu0 %v73_v2  ;;  %v61_v14 = vld [vmem:[#allocation5 + $0x8] sm:$0xff]  ;;  %v60_v15 = vld [vmem:[#allocation5] sm:$0xff]  ;;  %v58_v16 = vld [vmem:[#allocation2] sm:$0xff] }
  0x14   :  { %v59_v17 = vld [vmem:[#allocation7] sm:$0x7] }
  0x15   :  { %80 = vmatpush.msra.mxu0 %v72_v3  ;;  %v76_v18 = vperm.slane %v59_v17, 0  ;;  %v121_v37 = vperm.slane %v59_v17, 1  ;;  %v123_v39 = vperm.slane %v59_v17, 2 }
  0x17   :  { %81 = vmatpush.msra.mxu0 %v71_v4 }
  0x19   :  { %82 = vmatpush.msra.mxu0 %v70_v5 }
  0x1b   :  { %83 = vmatpush.msra.mxu0 %v69_v6 }
  0x1d   :  { %84 = vmatpush.msra.mxu0 %v68_v7 }
  0x1f   :  { %85 = vmatpush.msra.mxu0 %v67_v8 }
  0x21   :  { %86 = vmatpush.msra.mxu0 %v66_v9 }
  0x23   :  { %87 = vmatpush.msra.mxu0 %v65_v10 }
  0x25   :  { %88 = vmatpush.msra.mxu0 %v64_v11 }
  0x27   :  { %89 = vmatpush.msra.mxu0 %v63_v12 }
  0x29   :  { %90 = vmatpush.msra.mxu0 %v62_v13 }
  0x2b   :  { %91 = vmatpush.msra.mxu0 %v61_v14 }
  0x2d   :  { %92 = vmatpush.msra.mxu0 %v60_v15 }
  0x2e   :  { %93 = vmatmul.f32.vlgmr.msra.gmra.mxu0 %v58_v16 }
  0xab   :  { %v94_v19 = vpop.f32.mrf.mxu0 }
  0xac   :  { %v95_v20 = vadd.f32 %v94_v19, %v76_v18 }
  0xae   :  { %97 = vadd.xlane.f32.xlu0 %v95_v20 }
 0x121   :  { %v98_v23 = vpop.xlane.xlu0 %97 }
 0x122   :  { %v99_v24 = vmul.f32 0.03125, %v98_v23 }
 0x124   :  { %v103_v25 = vsub.f32 %v95_v20, %v99_v24 }
 0x126   :  { %v104_v26 = vsel %vm102_vm0, %v103_v25, 0.0 }
 0x127   :  { %v105_v27 = vmul.f32 %v104_v26, %v104_v26 }
 0x129   :  { %106 = vadd.xlane.f32.xlu0 %v105_v27 }
 0x19c   :  { %v107_v28 = vpop.xlane.xlu0 %106 }
 0x19d   :  { %v108_v29 = vmul.f32 0.03125, %v107_v28 }
 0x19f   :  { %v109_v30 = vadd.f32 1e-05, %v108_v29 }
 0x1a1   :  { %152 = vrsqrt.f32 %v109_v30  ;;  %vm116_vm2 = vweird.f32 %v109_v30 }
 0x1a7   :  { %v153_v31 = vpop.eup %152 }
 0x1a8   :  { %v111_v32 = vmul.f32 %v153_v31, %v109_v30  ;;  %vm117_vm1 = vweird.f32 %v153_v31 }
 0x1a9   :  { %vm118_vm3 = vmor %vm116_vm2, %vm117_vm1 }
 0x1aa   :  { %v112_v33 = vmul.f32 %v153_v31, %v111_v32 }
 0x1ac   :  { %v113_v34 = vmul.f32 0.5, %v112_v33 }
 0x1ae   :  { %v114_v35 = vsub.f32 1.5, %v113_v34 }
 0x1b0   :  { %v115_v36 = vmul.f32 %v153_v31, %v114_v35 }
 0x1b2   :  { %v119_v38 = vsel %vm118_vm3, %v153_v31, %v115_v36 }
 0x1b3   :  { %v120_v40 = vmul.f32 %v119_v38, %v104_v26 }
 0x1b5   :  { %v122_v41 = vmul.f32 %v121_v37, %v120_v40 }
 0x1b7   :  { %v124_v42 = vadd.f32 %v123_v39, %v122_v41 }
 0x1b9   :  { %v125_v43 = vmax.f32 %v124_v42, 0.0 }
 0x1bb   :  { %v126_v44 = vadd.f32 %v125_v43, %v58_v16 }
 0x1bd   :  { %127 = vst [vmem:[#allocation8] sm:$0xff] %v126_v44 }
 0x1be   :  { %138 = dma.vmem_to_hbm [thread:$0]  %s134_s2, 128, %s136_s30, [#allocation4]  }
 0x1bf   :  { %254 = dma.done.wait [#allocation4], 128  }
 0x1c0   :  { %255 = vsyncadd [#allocation4], 4294967168 }
 0x1c1   :  { %143 = vsyncpa [#allocation3], 1 }
 0x1c2   :  { %144 = vsyncpa [#allocation6], 1 }
 0x1c3   :  { %145 = vsyncpa [#allocation4], 1 }

</bundles_post_ra>
